<compile_context>
chip_gen: v6e
topology: v6e:2x2x1
jax: 0.10.0
libtpu: 0.0.40
codegen_flags: <defaults>
</compile_context>

<pallas_src>
import math

import jax
import jax.numpy as jnp
from jax.experimental import pallas as pl
from jax.experimental.pallas import tpu as pltpu

_LANE = 128
_SUBLANE = 8


def _round_up(n, m):
    return ((n + m - 1) // m) * m


# --------------------------------------------------------------------------- #
# Fused kernel
# --------------------------------------------------------------------------- #
def _make_mlp_kernel(activations):
    """Kernel signature: (x_ref, w0, b0, w1, b1, ..., o_ref).

    The whole forward pass runs on one batch tile with every weight/bias
    resident in VMEM.
    """
    n_layers = len(activations)

    def kernel(x_ref, *args):
        assert len(args) == 2 * n_layers + 1
        o_ref = args[-1]
        h = x_ref[...].astype(jnp.float32)
        for i, act in enumerate(activations):
            w = args[2 * i][...]          # bf16 (K_p, N_p): MXU-native operand
            b = args[2 * i + 1][...]      # f32  (1,  N_p): broadcast bias
            # bf16 operands, f32 accumulation on the MXU; elementwise stays f32.
            y = jnp.dot(h.astype(w.dtype), w,
                        preferred_element_type=jnp.float32) + b
            if act == "relu":
                y = jnp.maximum(y, 0.0)
            elif act == "tanh":
                y = jnp.tanh(y)
            elif act is not None:
                raise ValueError(f"unsupported activation: {act}")
            h = y
        o_ref[...] = h.astype(o_ref.dtype)

    return kernel


# --------------------------------------------------------------------------- #
# One-time parameter preparation (hoisted out of the per-call forward path)
# --------------------------------------------------------------------------- #
def prepare_mlp_params(params, param_dtype=jnp.bfloat16):
    """Pad once and cast weights to bf16.

    params: list of (w[in, out], b[1, out], activation_name_or_None), with w
    stored as (in, out) == torch weight.T.  Every K and every hidden width is
    zero-padded to a multiple of 128 (lane-dense, MXU-friendly); zero padding
    is numerically inert (relu(0)=0, tanh(0)=0).  The FINAL layer's output
    width is left unpadded so the kernel writes exactly out_features columns.
    """
    activations = tuple(act for _, _, act in params)
    in_features = params[0][0].shape[0]
    out_features = params[-1][0].shape[1]

    in_p = _round_up(in_features, _LANE)
    n = len(params)
    widths_p = []
    for idx, (w, _, _) in enumerate(params):
        widths_p.append(w.shape[1] if idx == n - 1 else _round_up(w.shape[1], _LANE))

    padded = []
    prev_p = in_p
    for (w, b, _), np_ in zip(params, widths_p):
        wp = jnp.pad(w, ((0, prev_p - w.shape[0]), (0, np_ - w.shape[1])))
        bp = jnp.pad(b, ((0, 0), (0, np_ - b.shape[1])))
        padded.append(wp.astype(param_dtype))     # bf16 MXU operand
        padded.append(bp.astype(jnp.float32))     # f32 bias (VPU)
        prev_p = np_

    return {
        "activations": activations,
        "padded_params": padded,
        "in_features": in_features,
        "in_padded": in_p,
        "out_features": out_features,
        "out_padded": widths_p[-1],
        "widths_padded": tuple(widths_p),
    }


# --------------------------------------------------------------------------- #
# Forward
# --------------------------------------------------------------------------- #
def mlp_forward(x, prepared, *, batch_tile=512):
    batch, in_features = x.shape
    assert in_features == prepared["in_features"]

    activations = prepared["activations"]
    padded_params = prepared["padded_params"]
    in_p = prepared["in_padded"]
    out_features = prepared["out_features"]
    out_p = prepared["out_padded"]
    widths_p = prepared["widths_padded"]

    # --- batch tiling: tb multiple of 8, minimal padding waste, >=2 grid
    # steps when the batch allows (both v7x TensorCores get work). -----------
    batch_tile = max(_SUBLANE, _round_up(int(batch_tile), _SUBLANE))
    batch_p = _round_up(batch, _SUBLANE)
    n_steps = pl.cdiv(batch_p, batch_tile)
    if batch_p >= 2 * _SUBLANE:
        n_steps = max(n_steps, 2)
    tb = _round_up(pl.cdiv(batch_p, n_steps), _SUBLANE)

    # --- VMEM budget: single-buffered resident params + double-buffered
    # input/output tiles + the widest intermediates of the fused chain. ------
    param_bytes = sum(int(a.size) * a.dtype.itemsize for a in padded_params)
    widest = max((in_p,) + widths_p)

    def footprint(tb_):
        io_bytes = 2 * tb_ * in_p * 4 + 2 * tb_ * out_p * 4
        inter_bytes = 3 * tb_ * widest * 4      # h (f32), bf16 copy, y (f32)
        return param_bytes + io_bytes + inter_bytes

    try:
        vmem_ceiling = int(0.75 * pltpu.get_tpu_info().vmem_capacity_bytes)
    except Exception:
        vmem_ceiling = 48 * 1024 * 1024          # safe under v7x's 64 MiB/TC

    while tb > _SUBLANE and footprint(tb) > vmem_ceiling:
        tb = _round_up(tb // 2, _SUBLANE)
    # TODO(synk): if param_bytes alone exceeds ~half the VMEM budget, stream the
    # widest layer's weight tiles with pltpu.emit_pipeline instead of keeping
    # every weight resident.

    batch_p = _round_up(batch_p, tb)
    grid = (batch_p // tb,)

    vmem_limit = int(min(vmem_ceiling,
                         max(32 * 1024 * 1024, 1.25 * footprint(tb))))

    # --- pad the input only when actually needed ----------------------------
    if batch_p != batch or in_p != in_features:
        x_in = jnp.pad(x, ((0, batch_p - batch), (0, in_p - in_features)))
    else:
        x_in = x

    kernel = _make_mlp_kernel(activations)

    def build_specs(single_buffer_params):
        in_specs = [pl.BlockSpec((tb, in_p), lambda i: (i, 0))]
        for arr in padded_params:
            # Constant index_map: loaded once, resident across all batch tiles.
            # Buffered(1) avoids allocating a useless second buffer per param.
            if single_buffer_params:
                spec = pl.BlockSpec(arr.shape, lambda i: (0, 0),
                                    pipeline_mode=pl.Buffered(1))
            else:
                spec = pl.BlockSpec(arr.shape, lambda i: (0, 0))
            in_specs.append(spec)
        return in_specs

    out_spec = pl.BlockSpec((tb, out_p), lambda i: (i, 0))
    out_shape = jax.ShapeDtypeStruct((batch_p, out_p), x.dtype)

    ks = (in_p,) + widths_p[:-1]
    flops = 2 * batch_p * sum(k * n for k, n in zip(ks, widths_p))
    transcendentals = batch_p * sum(
        n for n, act in zip(widths_p, activations) if act == "tanh")
    bytes_accessed = (int(x_in.size) * x_in.dtype.itemsize + param_bytes
                      + batch_p * out_p * x.dtype.itemsize)
    cost = pl.CostEstimate(flops=flops, transcendentals=transcendentals,
                           bytes_accessed=bytes_accessed)

    cparams = pltpu.CompilerParams(
        dimension_semantics=("parallel",),
        vmem_limit_bytes=vmem_limit)

    def run(single_buffer_params):
        return pl.pallas_call(
            kernel,
            out_shape=out_shape,
            grid=grid,
            in_specs=build_specs(single_buffer_params),
            out_specs=out_spec,
            compiler_params=cparams,
            cost_estimate=cost,
        )(x_in, *padded_params)

    try:
        out = run(True)
    except Exception:
        # Fallback for jax versions without BlockSpec pipeline_mode support.
        out = run(False)

    if batch_p != batch or out_p != out_features:
        out = out[:batch, :out_features]
    return out


# --------------------------------------------------------------------------- #
# Parameter construction mirroring torch.nn.Linear defaults
# --------------------------------------------------------------------------- #
def init_linear_params(key, in_features, out_features, dtype=jnp.float32):
    """Uniform(+-1/sqrt(in)) init, weight stored as (in, out) == torch weight.T."""
    k_w, k_b = jax.random.split(key)
    bound = 1.0 / math.sqrt(in_features)
    w = jax.random.uniform(k_w, (in_features, out_features), dtype,
                           minval=-bound, maxval=bound)
    b = jax.random.uniform(k_b, (1, out_features), dtype,
                           minval=-bound, maxval=bound)
    return w, b


def build_mlp_params(key, input_size, output_size, layers_data):
    """layers_data: list of (size, activation_name_or_None)."""
    params = []
    in_size = input_size
    for size, activation in layers_data:
        key, sub = jax.random.split(key)
        w, b = init_linear_params(sub, in_size, size)
        params.append((w, b, activation))
        in_size = size
    key, sub = jax.random.split(key)
    w, b = init_linear_params(sub, in_size, output_size)
    params.append((w, b, None))  # final linear layer, no activation
    return params


if __name__ == "__main__":
    # Shapes consistent with the module's forward:
    #   input_size=16, hidden layers [(32, ReLU), (32, Tanh)], output_size=8, batch=8
    input_size, output_size = 16, 8
    layers_data = [(32, "relu"), (32, "tanh")]
    batch = 8

    key = jax.random.PRNGKey(0)
    k_params, k_x = jax.random.split(key)
    params = build_mlp_params(k_params, input_size, output_size, layers_data)
    x = jax.random.normal(k_x, (batch, input_size), jnp.float32)

    prepared = prepare_mlp_params(params)   # one-time pad + bf16 cast
    out = mlp_forward(x, prepared)
    out = jax.block_until_ready(out)
    assert out.shape == (batch, output_size), out.shape

    # Pure-JAX reference with the same numerics (bf16 dot operands, f32 accum).
    ref = x.astype(jnp.float32)
    for w, b, act in params:
        ref = jnp.dot(ref.astype(jnp.bfloat16), w.astype(jnp.bfloat16),
                      preferred_element_type=jnp.float32) + b
        if act == "relu":
            ref = jnp.maximum(ref, 0.0)
        elif act == "tanh":
            ref = jnp.tanh(ref)
    assert jnp.allclose(out, ref, atol=1e-2, rtol=1e-2), (
        float(jnp.max(jnp.abs(out - ref))))

    print("KERNEL_OK")
</pallas_src>

<mosaic_0001>
module attributes {stable_mosaic.version = 11 : i64} {
  func.func @kernel(%arg0: i32, %arg1: memref<8x128xf32, #tpu.memory_space<vmem>>, %arg2: memref<128x128xbf16, #tpu.memory_space<vmem>>, %arg3: memref<1x128xf32, #tpu.memory_space<vmem>>, %arg4: memref<128x128xbf16, #tpu.memory_space<vmem>>, %arg5: memref<1x128xf32, #tpu.memory_space<vmem>>, %arg6: memref<128x8xbf16, #tpu.memory_space<vmem>>, %arg7: memref<1x8xf32, #tpu.memory_space<vmem>>, %arg8: memref<8x8xf32, #tpu.memory_space<vmem>>) attributes {dimension_semantics = [#tpu.dimension_semantics<parallel>], iteration_bounds = array<i64: 1>, scalar_prefetch = 0 : i64, scratch_operands = 0 : i64, tpu.core_type = #tpu.core_type<tc>, window_params = [{transform_indices = @transform_0, window_bounds = array<i64: 8, 128>}, {pipeline_mode = #tpu.pipeline_mode<synchronous>, transform_indices = @transform_1, window_bounds = array<i64: 128, 128>}, {pipeline_mode = #tpu.pipeline_mode<synchronous>, transform_indices = @transform_2, window_bounds = array<i64: 1, 128>}, {pipeline_mode = #tpu.pipeline_mode<synchronous>, transform_indices = @transform_3, window_bounds = array<i64: 128, 128>}, {pipeline_mode = #tpu.pipeline_mode<synchronous>, transform_indices = @transform_4, window_bounds = array<i64: 1, 128>}, {pipeline_mode = #tpu.pipeline_mode<synchronous>, transform_indices = @transform_5, window_bounds = array<i64: 128, 8>}, {pipeline_mode = #tpu.pipeline_mode<synchronous>, transform_indices = @transform_6, window_bounds = array<i64: 1, 8>}, {transform_indices = @transform_7, window_bounds = array<i64: 8, 8>}]} {
    %c0 = arith.constant 0 : index
    %c0_0 = arith.constant 0 : index
    %0 = vector.load %arg1[%c0, %c0_0] : memref<8x128xf32, #tpu.memory_space<vmem>>, vector<8x128xf32>
    %c0_1 = arith.constant 0 : index
    %c0_2 = arith.constant 0 : index
    %1 = vector.load %arg2[%c0_1, %c0_2] : memref<128x128xbf16, #tpu.memory_space<vmem>>, vector<128x128xbf16>
    %c0_3 = arith.constant 0 : index
    %c0_4 = arith.constant 0 : index
    %2 = vector.load %arg3[%c0_3, %c0_4] : memref<1x128xf32, #tpu.memory_space<vmem>>, vector<1x128xf32>
    %3 = arith.truncf %0 : vector<8x128xf32> to vector<8x128xbf16>
    %cst = arith.constant dense<0.000000e+00> : vector<8x128xf32>
    %4 = tpu.matmul %3, %1, %cst {dimension_numbers = #tpu.dot_dimension_numbers<[1], [0], [0], [1], [0, 0, 1, 1], [], []>} : vector<8x128xbf16>, vector<128x128xbf16>, vector<8x128xf32> -> vector<8x128xf32>
    %5 = vector.broadcast %2 : vector<1x128xf32> to vector<8x128xf32>
    %6 = arith.addf %4, %5 : vector<8x128xf32>
    %cst_5 = arith.constant 0.000000e+00 : f32
    %7 = vector.broadcast %cst_5 : f32 to vector<8x128xf32>
    %8 = arith.maximumf %6, %7 : vector<8x128xf32>
    %c0_6 = arith.constant 0 : index
    %c0_7 = arith.constant 0 : index
    %9 = vector.load %arg4[%c0_6, %c0_7] : memref<128x128xbf16, #tpu.memory_space<vmem>>, vector<128x128xbf16>
    %c0_8 = arith.constant 0 : index
    %c0_9 = arith.constant 0 : index
    %10 = vector.load %arg5[%c0_8, %c0_9] : memref<1x128xf32, #tpu.memory_space<vmem>>, vector<1x128xf32>
    %11 = arith.truncf %8 : vector<8x128xf32> to vector<8x128xbf16>
    %cst_10 = arith.constant dense<0.000000e+00> : vector<8x128xf32>
    %12 = tpu.matmul %11, %9, %cst_10 {dimension_numbers = #tpu.dot_dimension_numbers<[1], [0], [0], [1], [0, 0, 1, 1], [], []>} : vector<8x128xbf16>, vector<128x128xbf16>, vector<8x128xf32> -> vector<8x128xf32>
    %13 = vector.broadcast %10 : vector<1x128xf32> to vector<8x128xf32>
    %14 = arith.addf %12, %13 : vector<8x128xf32>
    %15 = math.tanh %14 : vector<8x128xf32>
    %c0_11 = arith.constant 0 : index
    %c0_12 = arith.constant 0 : index
    %16 = vector.load %arg6[%c0_11, %c0_12] : memref<128x8xbf16, #tpu.memory_space<vmem>>, vector<128x8xbf16>
    %c0_13 = arith.constant 0 : index
    %c0_14 = arith.constant 0 : index
    %17 = vector.load %arg7[%c0_13, %c0_14] : memref<1x8xf32, #tpu.memory_space<vmem>>, vector<1x8xf32>
    %18 = arith.truncf %15 : vector<8x128xf32> to vector<8x128xbf16>
    %cst_15 = arith.constant dense<0.000000e+00> : vector<8x8xf32>
    %19 = tpu.matmul %18, %16, %cst_15 {dimension_numbers = #tpu.dot_dimension_numbers<[1], [0], [0], [1], [0, 0, 1, 1], [], []>} : vector<8x128xbf16>, vector<128x8xbf16>, vector<8x8xf32> -> vector<8x8xf32>
    %20 = vector.broadcast %17 : vector<1x8xf32> to vector<8x8xf32>
    %21 = arith.addf %19, %20 : vector<8x8xf32>
    %c0_16 = arith.constant 0 : index
    %c0_17 = arith.constant 0 : index
    %22 = vector.load %arg8[%c0_16, %c0_17] : memref<8x8xf32, #tpu.memory_space<vmem>>, vector<8x8xf32>
    tpu.vector_store %arg8[%c0_16, %c0_17], %21 {strides = array<i32>} : memref<8x8xf32, #tpu.memory_space<vmem>>, vector<8x8xf32>,
    return
  }
  func.func @transform_0(%arg0: i32) -> (i32, i32) {
    %c0_i32 = arith.constant 0 : i32
    %c0_i32_0 = arith.constant 0 : i32
    return %arg0, %c0_i32 : i32, i32
  }
  func.func @transform_1(%arg0: i32) -> (i32, i32) {
    %c0_i32 = arith.constant 0 : i32
    %c0_i32_0 = arith.constant 0 : i32
    %c0_i32_1 = arith.constant 0 : i32
    return %c0_i32, %c0_i32_0 : i32, i32
  }
  func.func @transform_2(%arg0: i32) -> (i32, i32) {
    %c0_i32 = arith.constant 0 : i32
    %c0_i32_0 = arith.constant 0 : i32
    %c0_i32_1 = arith.constant 0 : i32
    return %c0_i32, %c0_i32_0 : i32, i32
  }
  func.func @transform_3(%arg0: i32) -> (i32, i32) {
    %c0_i32 = arith.constant 0 : i32
    %c0_i32_0 = arith.constant 0 : i32
    %c0_i32_1 = arith.constant 0 : i32
    return %c0_i32, %c0_i32_0 : i32, i32
  }
  func.func @transform_4(%arg0: i32) -> (i32, i32) {
    %c0_i32 = arith.constant 0 : i32
    %c0_i32_0 = arith.constant 0 : i32
    %c0_i32_1 = arith.constant 0 : i32
    return %c0_i32, %c0_i32_0 : i32, i32
  }
  func.func @transform_5(%arg0: i32) -> (i32, i32) {
    %c0_i32 = arith.constant 0 : i32
    %c0_i32_0 = arith.constant 0 : i32
    %c0_i32_1 = arith.constant 0 : i32
    return %c0_i32, %c0_i32_0 : i32, i32
  }
  func.func @transform_6(%arg0: i32) -> (i32, i32) {
    %c0_i32 = arith.constant 0 : i32
    %c0_i32_0 = arith.constant 0 : i32
    %c0_i32_1 = arith.constant 0 : i32
    return %c0_i32, %c0_i32_0 : i32, i32
  }
  func.func @transform_7(%arg0: i32) -> (i32, i32) {
    %c0_i32 = arith.constant 0 : i32
    %c0_i32_0 = arith.constant 0 : i32
    return %arg0, %c0_i32 : i32, i32
  }
}

module attributes {stable_mosaic.version = 11 : i64} {
  func.func @kernel(%arg0: i32, %arg1: memref<8x128xf32, #tpu.memory_space<vmem>>, %arg2: memref<128x128xbf16, #tpu.memory_space<vmem>>, %arg3: memref<1x128xf32, #tpu.memory_space<vmem>>, %arg4: memref<128x128xbf16, #tpu.memory_space<vmem>>, %arg5: memref<1x128xf32, #tpu.memory_space<vmem>>, %arg6: memref<128x8xbf16, #tpu.memory_space<vmem>>, %arg7: memref<1x8xf32, #tpu.memory_space<vmem>>, %arg8: memref<8x8xf32, #tpu.memory_space<vmem>>) attributes {dimension_semantics = [#tpu.dimension_semantics<parallel>], iteration_bounds = array<i64: 1>, scalar_prefetch = 0 : i64, scratch_operands = 0 : i64, tpu.core_type = #tpu.core_type<tc>, window_params = [{transform_indices = @transform_0, window_bounds = array<i64: 8, 128>}, {pipeline_mode = #tpu.pipeline_mode<synchronous>, transform_indices = @transform_1, window_bounds = array<i64: 128, 128>}, {pipeline_mode = #tpu.pipeline_mode<synchronous>, transform_indices = @transform_2, window_bounds = array<i64: 1, 128>}, {pipeline_mode = #tpu.pipeline_mode<synchronous>, transform_indices = @transform_3, window_bounds = array<i64: 128, 128>}, {pipeline_mode = #tpu.pipeline_mode<synchronous>, transform_indices = @transform_4, window_bounds = array<i64: 1, 128>}, {pipeline_mode = #tpu.pipeline_mode<synchronous>, transform_indices = @transform_5, window_bounds = array<i64: 128, 8>}, {pipeline_mode = #tpu.pipeline_mode<synchronous>, transform_indices = @transform_6, window_bounds = array<i64: 1, 8>}, {transform_indices = @transform_7, window_bounds = array<i64: 8, 8>}]} {
    %c0 = arith.constant 0 : index
    %c0_0 = arith.constant 0 : index
    %0 = vector.load %arg1[%c0, %c0_0] : memref<8x128xf32, #tpu.memory_space<vmem>>, vector<8x128xf32>
    %c0_1 = arith.constant 0 : index
    %c0_2 = arith.constant 0 : index
    %1 = vector.load %arg2[%c0_1, %c0_2] : memref<128x128xbf16, #tpu.memory_space<vmem>>, vector<128x128xbf16>
    %c0_3 = arith.constant 0 : index
    %c0_4 = arith.constant 0 : index
    %2 = vector.load %arg3[%c0_3, %c0_4] : memref<1x128xf32, #tpu.memory_space<vmem>>, vector<1x128xf32>
    %3 = arith.truncf %0 : vector<8x128xf32> to vector<8x128xbf16>
    %cst = arith.constant dense<0.000000e+00> : vector<8x128xf32>
    %4 = tpu.matmul %3, %1, %cst {dimension_numbers = #tpu.dot_dimension_numbers<[1], [0], [0], [1], [0, 0, 1, 1], [], []>} : vector<8x128xbf16>, vector<128x128xbf16>, vector<8x128xf32> -> vector<8x128xf32>
    %5 = vector.broadcast %2 : vector<1x128xf32> to vector<8x128xf32>
    %6 = arith.addf %4, %5 : vector<8x128xf32>
    %cst_5 = arith.constant 0.000000e+00 : f32
    %7 = vector.broadcast %cst_5 : f32 to vector<8x128xf32>
    %8 = arith.maximumf %6, %7 : vector<8x128xf32>
    %c0_6 = arith.constant 0 : index
    %c0_7 = arith.constant 0 : index
    %9 = vector.load %arg4[%c0_6, %c0_7] : memref<128x128xbf16, #tpu.memory_space<vmem>>, vector<128x128xbf16>
    %c0_8 = arith.constant 0 : index
    %c0_9 = arith.constant 0 : index
    %10 = vector.load %arg5[%c0_8, %c0_9] : memref<1x128xf32, #tpu.memory_space<vmem>>, vector<1x128xf32>
    %11 = arith.truncf %8 : vector<8x128xf32> to vector<8x128xbf16>
    %cst_10 = arith.constant dense<0.000000e+00> : vector<8x128xf32>
    %12 = tpu.matmul %11, %9, %cst_10 {dimension_numbers = #tpu.dot_dimension_numbers<[1], [0], [0], [1], [0, 0, 1, 1], [], []>} : vector<8x128xbf16>, vector<128x128xbf16>, vector<8x128xf32> -> vector<8x128xf32>
    %13 = vector.broadcast %10 : vector<1x128xf32> to vector<8x128xf32>
    %14 = arith.addf %12, %13 : vector<8x128xf32>
    %15 = math.tanh %14 : vector<8x128xf32>
    %c0_11 = arith.constant 0 : index
    %c0_12 = arith.constant 0 : index
    %16 = vector.load %arg6[%c0_11, %c0_12] : memref<128x8xbf16, #tpu.memory_space<vmem>>, vector<128x8xbf16>
    %c0_13 = arith.constant 0 : index
    %c0_14 = arith.constant 0 : index
    %17 = vector.load %arg7[%c0_13, %c0_14] : memref<1x8xf32, #tpu.memory_space<vmem>>, vector<1x8xf32>
    %18 = arith.truncf %15 : vector<8x128xf32> to vector<8x128xbf16>
    %cst_15 = arith.constant dense<0.000000e+00> : vector<8x8xf32>
    %19 = tpu.matmul %18, %16, %cst_15 {dimension_numbers = #tpu.dot_dimension_numbers<[1], [0], [0], [1], [0, 0, 1, 1], [], []>} : vector<8x128xbf16>, vector<128x8xbf16>, vector<8x8xf32> -> vector<8x8xf32>
    %20 = vector.broadcast %17 : vector<1x8xf32> to vector<8x8xf32>
    %21 = arith.addf %19, %20 : vector<8x8xf32>
    %c0_16 = arith.constant 0 : index
    %c0_17 = arith.constant 0 : index
    %22 = vector.load %arg8[%c0_16, %c0_17] : memref<8x8xf32, #tpu.memory_space<vmem>>, vector<8x8xf32>
    tpu.vector_store %arg8[%c0_16, %c0_17], %21 {strides = array<i32>} : memref<8x8xf32, #tpu.memory_space<vmem>>, vector<8x8xf32>,
    return
  }
  func.func @transform_0(%arg0: i32) -> (i32, i32) {
    %c0_i32 = arith.constant 0 : i32
    %c0_i32_0 = arith.constant 0 : i32
    return %arg0, %c0_i32 : i32, i32
  }
  func.func @transform_1(%arg0: i32) -> (i32, i32) {
    %c0_i32 = arith.constant 0 : i32
    %c0_i32_0 = arith.constant 0 : i32
    %c0_i32_1 = arith.constant 0 : i32
    return %c0_i32, %c0_i32_0 : i32, i32
  }
  func.func @transform_2(%arg0: i32) -> (i32, i32) {
    %c0_i32 = arith.constant 0 : i32
    %c0_i32_0 = arith.constant 0 : i32
    %c0_i32_1 = arith.constant 0 : i32
    return %c0_i32, %c0_i32_0 : i32, i32
  }
  func.func @transform_3(%arg0: i32) -> (i32, i32) {
    %c0_i32 = arith.constant 0 : i32
    %c0_i32_0 = arith.constant 0 : i32
    %c0_i32_1 = arith.constant 0 : i32
    return %c0_i32, %c0_i32_0 : i32, i32
  }
  func.func @transform_4(%arg0: i32) -> (i32, i32) {
    %c0_i32 = arith.constant 0 : i32
    %c0_i32_0 = arith.constant 0 : i32
    %c0_i32_1 = arith.constant 0 : i32
    return %c0_i32, %c0_i32_0 : i32, i32
  }
  func.func @transform_5(%arg0: i32) -> (i32, i32) {
    %c0_i32 = arith.constant 0 : i32
    %c0_i32_0 = arith.constant 0 : i32
    %c0_i32_1 = arith.constant 0 : i32
    return %c0_i32, %c0_i32_0 : i32, i32
  }
  func.func @transform_6(%arg0: i32) -> (i32, i32) {
    %c0_i32 = arith.constant 0 : i32
    %c0_i32_0 = arith.constant 0 : i32
    %c0_i32_1 = arith.constant 0 : i32
    return %c0_i32, %c0_i32_0 : i32, i32
  }
  func.func @transform_7(%arg0: i32) -> (i32, i32) {
    %c0_i32 = arith.constant 0 : i32
    %c0_i32_0 = arith.constant 0 : i32
    return %arg0, %c0_i32 : i32, i32
  }
}

</mosaic_0001>

<bundles_post_ra>
// kernel: tpu_custom_call.1
= control target key start
LH: loop header
LB: loop body
LE: loop exit
PB: predicated region body
PF: predicated region fallthrough
CT: control target
= control target key end

     0   :  { %12 = vsyncpa [#allocation3], 0  ;;  %s767_s0 = inlined_call_operand.hbm [shape: f32[8,128], index: 0, kind: input, shape index: {}]   ;;  %s768_s1 = inlined_call_operand.vmem [shape: bf16[128,128], index: 1, kind: input, shape index: {}]   ;;  %s769_s2 = inlined_call_operand.vmem [shape: f32[1,128], index: 2, kind: input, shape index: {}]   ;;  %s770_s3 = inlined_call_operand.hbm [shape: bf16[128,128], index: 3, kind: input, shape index: {}]   ;;  %s771_s4 = inlined_call_operand.vmem [shape: f32[1,128], index: 4, kind: input, shape index: {}]   ;;  %s772_s5 = inlined_call_operand.vmem [shape: bf16[128,8], index: 5, kind: input, shape index: {}]   ;;  %s773_s6 = inlined_call_operand.vmem [shape: f32[1,8], index: 6, kind: input, shape index: {}]   ;;  %s774_s7 = inlined_call_operand.hbm [shape: f32[8,8], index: 7, kind: output, shape index: {}]  }
   0x1   :  { %13 = vsyncpa [#allocation6], 0 }
   0x2   :  { %14 = vsyncpa [#allocation4], 0  ;;  %s624_s24 = smov [#allocation2]   ;;  %s625_s26 = smov [#allocation5]  }
   0x3   :  { %s21_s25 = sshll.u32 %s624_s24, 4  ;;  %s34_s27 = sshll.u32 %s625_s26, 4  ;;  %s22_s25 = int_to_ptr.vmem [resolvable:$true] %s21_s25  ;;  %s35_s27 = int_to_ptr.vmem [resolvable:$true] %s34_s27 }
   0x4   :  { %s566_s28 = scalar_lea.vmem %s22_s25, 128  ;;  %p571_p1 = scmp.lt.s32.totalorder %s22_s25, %s22_s25 }
   0x5   :  { %p567_p0 = scmp.ne.s32.totalorder %s22_s25, %s566_s28  ;;  %p572_p2 = scmp.lt.s32.totalorder %s566_s28, %s566_s28 }
   0x7   :  { %p573_p3 = por %p572_p2, %p571_p1 }
   0x9   :  { %p574_p4 = pnand %p573_p3, %p567_p0 }
   0xb   :  { %577 = shalt.err (!%p574_p4)
}
   0xc   :  { %24 = dma.hbm_to_vmem [thread:$0]  %s767_s0, 128, %s22_s25, [#allocation3]  }
   0xd   :  { %s586_s8 = scalar_lea.vmem %s35_s27, 1024  ;;  %p591_p6 = scmp.lt.s32.totalorder %s35_s27, %s35_s27 }
   0xe   :  { %p587_p5 = scmp.ne.s32.totalorder %s35_s27, %s586_s8  ;;  %p592_p7 = scmp.lt.s32.totalorder %s586_s8, %s586_s8 }
  0x10   :  { %p593_p8 = por %p592_p7, %p591_p6 }
  0x12   :  { %p594_p9 = pnand %p593_p8, %p587_p5 }
  0x14   :  { %597 = shalt.err (!%p594_p9)
}
  0x15   :  { %s626_s9 = smov 64   ;;  %s627_s10 = smov 4  }
  0x16   :  { %40 = dma.hbm_to_vmem [thread:$0]  %s770_s3, 1024, %s35_s27, [#allocation6], %s626_s9, %s626_s9, %s627_s10  }
  0x17   :  { %618 = dma.done.wait [#allocation3], 128  }
  0x18   :  { %619 = vsyncadd [#allocation3], 4294967168 }
  0x19   :  { %620 = dma.done.wait [#allocation6], 1024  }
  0x1a   :  { %621 = vsyncadd [#allocation6], 4294966272  ;;  %v628_v0 = vmov 0.0   ;;  %vm629_vm0 = vmmov 0   ;;  %v532_v1 = vld [vmem:[%s768_s1 + $0x38] sm:$0xff]   ;;  %v533_v2 = vld [vmem:[%s768_s1 + $0x30] sm:$0xff]  }
  0x1b   :  { %465 = vmatprep.subr.bf16.mxu0 %v628_v0  ;;  %481 = vmatprep.mubr.msk.bf16.mxu0 %vm629_vm0, %v628_v0  ;;  %v534_v3 = vld [vmem:[%s768_s1 + $0x28] sm:$0xff]   ;;  %v540_v4 = vld [vmem:[#allocation5 + $0x38] sm:$0xff]   ;;  %v541_v6 = vld [vmem:[#allocation5 + $0x30] sm:$0xff]   ;;  %s630_s22 = smov [#allocation7]   ;;  %vm393_vm1 = vcmask 64512  }
  0x1c   :  { %485 = vmatprep.subr.bf16.mxu1 %v628_v0  ;;  %501 = vmatprep.mubr.msk.bf16.mxu1 %vm629_vm0, %v628_v0  ;;  %v535_v5 = vld [vmem:[%s768_s1 + $0x20] sm:$0xff]   ;;  %v536_v7 = vld [vmem:[%s768_s1 + $0x18] sm:$0xff]   ;;  %v542_v8 = vld [vmem:[#allocation5 + $0x28] sm:$0xff]  }
  0x1d   :  { %466 = vmatpush3.bf16.msra.mxu0 %v532_v1  ;;  %486 = vmatpush3.bf16.msra.mxu1 %v540_v4  ;;  %v537_v9 = vld [vmem:[%s768_s1 + $0x10] sm:$0xff]   ;;  %v543_v10 = vld [vmem:[#allocation5 + $0x20] sm:$0xff]   ;;  %v544_v12 = vld [vmem:[#allocation5 + $0x18] sm:$0xff]  }
  0x1e   :  { %467 = vmatprep.subr.bf16.mxu0 %v628_v0  ;;  %487 = vmatprep.subr.bf16.mxu1 %v628_v0  ;;  %v538_v11 = vld [vmem:[%s768_s1 + $0x8] sm:$0xff]   ;;  %v539_v13 = vld [vmem:[%s768_s1] sm:$0xff]   ;;  %v545_v15 = vld [vmem:[#allocation5 + $0x10] sm:$0xff]  }
  0x1f   :  { %v54_v14 = vld [vmem:[#allocation2] sm:$0xff]  ;;  %v546_v17 = vld [vmem:[#allocation5 + $0x8] sm:$0xff]   ;;  %v547_v18 = vld [vmem:[#allocation5] sm:$0xff]  }
  0x20   :  { %v72_v16 = vpack.c.bf16 %v54_v14, %v54_v14  ;;  %v548_v19 = vld [vmem:[%s772_s5 + $0x38] sm:$0xff]   ;;  %v549_v20 = vld [vmem:[%s772_s5 + $0x30] sm:$0xff]   ;;  %v550_v21 = vld [vmem:[%s772_s5 + $0x28] sm:$0xff]  }
  0x21   :  { %468 = vmatpush3.bf16.msra.mxu0 %v533_v2  ;;  %488 = vmatpush3.bf16.msra.mxu1 %v541_v6  ;;  %v411_v22 = vld [vmem:[%s769_s2] ss:$0 sm:$0xff]  ;;  %v552_v31 = vld [vmem:[%s772_s5 + $0x18] sm:$0xff]   ;;  %v553_v32 = vld [vmem:[%s772_s5 + $0x10] sm:$0xff]  }
  0x22   :  { %469 = vmatprep.subr.bf16.mxu0 %v628_v0  ;;  %489 = vmatprep.subr.bf16.mxu1 %v628_v0  ;;  %v551_v30 = vld [vmem:[%s772_s5 + $0x20] sm:$0xff]   ;;  %v554_v33 = vld [vmem:[%s772_s5 + $0x8] sm:$0xff]  }
  0x23   :  { %v555_v34 = vld [vmem:[%s772_s5] sm:$0xff]   ;;  %s401_s5 = sshll.u32 %s630_s22, 4  ;;  %s402_s5 = int_to_ptr.vmem [resolvable:$true] %s401_s5 }
  0x24   :  { %v420_v35 = vld [vmem:[%s771_s4] ss:$0 sm:$0xff]  ;;  %s598_s4 = scalar_lea.vmem %s402_s5, 128  ;;  %p603_p11 = scmp.lt.s32.totalorder %s402_s5, %s402_s5 }
  0x25   :  { %470 = vmatpush3.bf16.msra.mxu0 %v534_v3  ;;  %490 = vmatpush3.bf16.msra.mxu1 %v542_v8  ;;  %v429_v43 = vld [vmem:[%s773_s6] ss:$0 sm:$0xff]  ;;  %p599_p10 = scmp.ne.s32.totalorder %s402_s5, %s598_s4  ;;  %p604_p12 = scmp.lt.s32.totalorder %s598_s4, %s598_s4 }
  0x26   :  { %471 = vmatprep.subr.bf16.mxu0 %v628_v0  ;;  %491 = vmatprep.subr.bf16.mxu1 %v628_v0 }
  0x27   :  { %p605_p13 = por %p604_p12, %p603_p11 }
  0x29   :  { %472 = vmatpush3.bf16.msra.mxu0 %v535_v5  ;;  %492 = vmatpush3.bf16.msra.mxu1 %v543_v10  ;;  %p606_p0 = pnand %p605_p13, %p599_p10 }
  0x2a   :  { %473 = vmatprep.subr.bf16.mxu0 %v628_v0  ;;  %493 = vmatprep.subr.bf16.mxu1 %v628_v0 }
  0x2d   :  { %474 = vmatpush3.bf16.msra.mxu0 %v536_v7  ;;  %494 = vmatpush3.bf16.msra.mxu1 %v544_v12 }
  0x2e   :  { %475 = vmatprep.subr.bf16.mxu0 %v628_v0  ;;  %495 = vmatprep.subr.bf16.mxu1 %v628_v0 }
  0x31   :  { %476 = vmatpush3.bf16.msra.mxu0 %v537_v9  ;;  %496 = vmatpush3.bf16.msra.mxu1 %v545_v15 }
  0x32   :  { %477 = vmatprep.subr.bf16.mxu0 %v628_v0  ;;  %497 = vmatprep.subr.bf16.mxu1 %v628_v0 }
  0x35   :  { %478 = vmatpush3.bf16.msra.mxu0 %v538_v11  ;;  %498 = vmatpush3.bf16.msra.mxu1 %v546_v17 }
  0x36   :  { %479 = vmatprep.subr.bf16.mxu0 %v628_v0  ;;  %499 = vmatprep.subr.bf16.mxu1 %v628_v0 }
  0x39   :  { %480 = vmatpush3.bf16.msra.mxu0 %v539_v13  ;;  %500 = vmatpush3.bf16.msra.mxu1 %v547_v18 }
  0x3a   :  { %505 = vmatprep.subr.bf16.mxu0 %v628_v0 }
  0x3c   :  { %482 = vmatmul.mubr.bf16.vlgmr.msra.gmra.mxu0 %v72_v16 }
  0x3d   :  { %521 = vmatprep.mubr.msk.bf16.mxu0 %vm629_vm0, %v628_v0  ;;  %506 = vmatpush3.bf16.msra.mxu0 %v548_v19 }
  0x3e   :  { %507 = vmatprep.subr.bf16.mxu0 %v628_v0 }
  0x41   :  { %508 = vmatpush3.bf16.msra.mxu0 %v549_v20 }
  0x42   :  { %509 = vmatprep.subr.bf16.mxu0 %v628_v0 }
  0x45   :  { %510 = vmatpush3.bf16.msra.mxu0 %v550_v21 }
  0x46   :  { %511 = vmatprep.subr.bf16.mxu0 %v628_v0 }
  0x49   :  { %512 = vmatpush3.bf16.msra.mxu0 %v551_v30 }
  0x4a   :  { %513 = vmatprep.subr.bf16.mxu0 %v628_v0 }
  0x4d   :  { %514 = vmatpush3.bf16.msra.mxu0 %v552_v31 }
  0x4e   :  { %515 = vmatprep.subr.bf16.mxu0 %v628_v0 }
  0x51   :  { %516 = vmatpush3.bf16.msra.mxu0 %v553_v32 }
  0x52   :  { %517 = vmatprep.subr.bf16.mxu0 %v628_v0 }
  0x55   :  { %518 = vmatpush3.bf16.msra.mxu0 %v554_v33 }
  0x56   :  { %519 = vmatprep.subr.bf16.mxu0 %v628_v0 }
  0x59   :  { %520 = vmatpush3.bf16.msra.mxu0 %v555_v34 }
  0xfc   :  { %v161_v23 = vpop.f32.mrf.mxu0 }
  0xfd   :  { %v162_v24 = vadd.f32 %v411_v22, %v161_v23 }
  0xfe   :  { %v483_v25 = vpop.f32.mrf.mxu0 }
  0xff   :  { %v167_v26 = vmax.f32 %v162_v24, 0.0 }
 0x100   :  { %v164_v27 = vpop.f32.mrf.mxu0 }
 0x101   :  { %v185_v28 = vpack.c.bf16 %v167_v26, %v167_v26 }
 0x102   :  { %v484_v29 = vpop.f32.mrf.mxu0 }
 0x103   :  { %502 = vmatmul.mubr.bf16.vlgmr.msra.gmra.mxu1 %v185_v28 }
 0x1c3   :  { %v274_v36 = vpop.f32.mrf.mxu1 }
 0x1c4   :  { %v275_v37 = vadd.f32 %v420_v35, %v274_v36 }
 0x1c5   :  { %v503_v38 = vpop.f32.mrf.mxu1 }
 0x1c6   :  { %556 = vtanh.f32 %v275_v37 }
 0x1c7   :  { %v277_v39 = vpop.f32.mrf.mxu1 }
 0x1c9   :  { %v504_v40 = vpop.f32.mrf.mxu1 }
 0x1d3   :  { %v557_v41 = vpop.eup %556 }
 0x1d4   :  { %v298_v42 = vpack.c.bf16 %v557_v41, %v557_v41 }
 0x1d6   :  { %522 = vmatmul.mubr.bf16.vlgmr.msra.gmra.mxu0 %v298_v42 }
 0x296   :  { %v387_v44 = vpop.f32.mrf.mxu0 }
 0x297   :  { %v388_v45 = vadd.f32 %v429_v43, %v387_v44 }
 0x298   :  { %v523_v46 = vpop.f32.mrf.mxu0 }
 0x299   :  { %394 = vst.msk [vmem:[#allocation7] sm:$0xff] %vm393_vm1, %v388_v45 }
 0x29a   :  { %v390_v47 = vpop.f32.mrf.mxu0 }
 0x29b   :  { %609 = shalt.err (!%p606_p0)
}
 0x29c   :  { %404 = dma.vmem_to_hbm [thread:$0]  %s402_s5, 128, %s774_s7, [#allocation4]   ;;  %v524_v48 = vpop.f32.mrf.mxu0 }
 0x29d   :  { %622 = dma.done.wait [#allocation4], 128  }
 0x29e   :  { %623 = vsyncadd [#allocation4], 4294967168 }
 0x29f   :  { %408 = vsyncpa [#allocation3], 1 }
 0x2a0   :  { %409 = vsyncpa [#allocation6], 1 }
 0x2a1   :  { %410 = vsyncpa [#allocation4], 1 }

// kernel: tpu_custom_call.1
= control target key start
LH: loop header
LB: loop body
LE: loop exit
PB: predicated region body
PF: predicated region fallthrough
CT: control target
= control target key end

     0   :  { %12 = vsyncpa [#allocation3], 0  ;;  %s767_s0 = inlined_call_operand.hbm [shape: f32[8,128], index: 0, kind: input, shape index: {}]   ;;  %s768_s1 = inlined_call_operand.vmem [shape: bf16[128,128], index: 1, kind: input, shape index: {}]   ;;  %s769_s2 = inlined_call_operand.vmem [shape: f32[1,128], index: 2, kind: input, shape index: {}]   ;;  %s770_s3 = inlined_call_operand.hbm [shape: bf16[128,128], index: 3, kind: input, shape index: {}]   ;;  %s771_s4 = inlined_call_operand.vmem [shape: f32[1,128], index: 4, kind: input, shape index: {}]   ;;  %s772_s5 = inlined_call_operand.vmem [shape: bf16[128,8], index: 5, kind: input, shape index: {}]   ;;  %s773_s6 = inlined_call_operand.vmem [shape: f32[1,8], index: 6, kind: input, shape index: {}]   ;;  %s774_s7 = inlined_call_operand.hbm [shape: f32[8,8], index: 7, kind: output, shape index: {}]  }
   0x1   :  { %13 = vsyncpa [#allocation6], 0 }
   0x2   :  { %14 = vsyncpa [#allocation4], 0  ;;  %s624_s24 = smov [#allocation2]   ;;  %s625_s26 = smov [#allocation5]  }
   0x3   :  { %s21_s25 = sshll.u32 %s624_s24, 4  ;;  %s34_s27 = sshll.u32 %s625_s26, 4  ;;  %s22_s25 = int_to_ptr.vmem [resolvable:$true] %s21_s25  ;;  %s35_s27 = int_to_ptr.vmem [resolvable:$true] %s34_s27 }
   0x4   :  { %s566_s28 = scalar_lea.vmem %s22_s25, 128  ;;  %p571_p1 = scmp.lt.s32.totalorder %s22_s25, %s22_s25 }
   0x5   :  { %p567_p0 = scmp.ne.s32.totalorder %s22_s25, %s566_s28  ;;  %p572_p2 = scmp.lt.s32.totalorder %s566_s28, %s566_s28 }
   0x7   :  { %p573_p3 = por %p572_p2, %p571_p1 }
   0x9   :  { %p574_p4 = pnand %p573_p3, %p567_p0 }
   0xb   :  { %577 = shalt.err (!%p574_p4)
}
   0xc   :  { %24 = dma.hbm_to_vmem [thread:$0]  %s767_s0, 128, %s22_s25, [#allocation3]  }
   0xd   :  { %s586_s8 = scalar_lea.vmem %s35_s27, 1024  ;;  %p591_p6 = scmp.lt.s32.totalorder %s35_s27, %s35_s27 }
   0xe   :  { %p587_p5 = scmp.ne.s32.totalorder %s35_s27, %s586_s8  ;;  %p592_p7 = scmp.lt.s32.totalorder %s586_s8, %s586_s8 }
  0x10   :  { %p593_p8 = por %p592_p7, %p591_p6 }
  0x12   :  { %p594_p9 = pnand %p593_p8, %p587_p5 }
  0x14   :  { %597 = shalt.err (!%p594_p9)
}
  0x15   :  { %s626_s9 = smov 64   ;;  %s627_s10 = smov 4  }
  0x16   :  { %40 = dma.hbm_to_vmem [thread:$0]  %s770_s3, 1024, %s35_s27, [#allocation6], %s626_s9, %s626_s9, %s627_s10  }
  0x17   :  { %618 = dma.done.wait [#allocation3], 128  }
  0x18   :  { %619 = vsyncadd [#allocation3], 4294967168 }
  0x19   :  { %620 = dma.done.wait [#allocation6], 1024  }
  0x1a   :  { %621 = vsyncadd [#allocation6], 4294966272  ;;  %v628_v0 = vmov 0.0   ;;  %vm629_vm0 = vmmov 0   ;;  %v532_v1 = vld [vmem:[%s768_s1 + $0x38] sm:$0xff]   ;;  %v533_v2 = vld [vmem:[%s768_s1 + $0x30] sm:$0xff]  }
  0x1b   :  { %465 = vmatprep.subr.bf16.mxu0 %v628_v0  ;;  %481 = vmatprep.mubr.msk.bf16.mxu0 %vm629_vm0, %v628_v0  ;;  %v534_v3 = vld [vmem:[%s768_s1 + $0x28] sm:$0xff]   ;;  %v540_v4 = vld [vmem:[#allocation5 + $0x38] sm:$0xff]   ;;  %v541_v6 = vld [vmem:[#allocation5 + $0x30] sm:$0xff]   ;;  %s630_s22 = smov [#allocation7]   ;;  %vm393_vm1 = vcmask 64512  }
  0x1c   :  { %485 = vmatprep.subr.bf16.mxu1 %v628_v0  ;;  %501 = vmatprep.mubr.msk.bf16.mxu1 %vm629_vm0, %v628_v0  ;;  %v535_v5 = vld [vmem:[%s768_s1 + $0x20] sm:$0xff]   ;;  %v536_v7 = vld [vmem:[%s768_s1 + $0x18] sm:$0xff]   ;;  %v542_v8 = vld [vmem:[#allocation5 + $0x28] sm:$0xff]  }
  0x1d   :  { %466 = vmatpush3.bf16.msra.mxu0 %v532_v1  ;;  %486 = vmatpush3.bf16.msra.mxu1 %v540_v4  ;;  %v537_v9 = vld [vmem:[%s768_s1 + $0x10] sm:$0xff]   ;;  %v543_v10 = vld [vmem:[#allocation5 + $0x20] sm:$0xff]   ;;  %v544_v12 = vld [vmem:[#allocation5 + $0x18] sm:$0xff]  }
  0x1e   :  { %467 = vmatprep.subr.bf16.mxu0 %v628_v0  ;;  %487 = vmatprep.subr.bf16.mxu1 %v628_v0  ;;  %v538_v11 = vld [vmem:[%s768_s1 + $0x8] sm:$0xff]   ;;  %v539_v13 = vld [vmem:[%s768_s1] sm:$0xff]   ;;  %v545_v15 = vld [vmem:[#allocation5 + $0x10] sm:$0xff]  }
  0x1f   :  { %v54_v14 = vld [vmem:[#allocation2] sm:$0xff]  ;;  %v546_v17 = vld [vmem:[#allocation5 + $0x8] sm:$0xff]   ;;  %v547_v18 = vld [vmem:[#allocation5] sm:$0xff]  }
  0x20   :  { %v72_v16 = vpack.c.bf16 %v54_v14, %v54_v14  ;;  %v548_v19 = vld [vmem:[%s772_s5 + $0x38] sm:$0xff]   ;;  %v549_v20 = vld [vmem:[%s772_s5 + $0x30] sm:$0xff]   ;;  %v550_v21 = vld [vmem:[%s772_s5 + $0x28] sm:$0xff]  }
  0x21   :  { %468 = vmatpush3.bf16.msra.mxu0 %v533_v2  ;;  %488 = vmatpush3.bf16.msra.mxu1 %v541_v6  ;;  %v411_v22 = vld [vmem:[%s769_s2] ss:$0 sm:$0xff]  ;;  %v552_v31 = vld [vmem:[%s772_s5 + $0x18] sm:$0xff]   ;;  %v553_v32 = vld [vmem:[%s772_s5 + $0x10] sm:$0xff]  }
  0x22   :  { %469 = vmatprep.subr.bf16.mxu0 %v628_v0  ;;  %489 = vmatprep.subr.bf16.mxu1 %v628_v0  ;;  %v551_v30 = vld [vmem:[%s772_s5 + $0x20] sm:$0xff]   ;;  %v554_v33 = vld [vmem:[%s772_s5 + $0x8] sm:$0xff]  }
  0x23   :  { %v555_v34 = vld [vmem:[%s772_s5] sm:$0xff]   ;;  %s401_s5 = sshll.u32 %s630_s22, 4  ;;  %s402_s5 = int_to_ptr.vmem [resolvable:$true] %s401_s5 }
  0x24   :  { %v420_v35 = vld [vmem:[%s771_s4] ss:$0 sm:$0xff]  ;;  %s598_s4 = scalar_lea.vmem %s402_s5, 128  ;;  %p603_p11 = scmp.lt.s32.totalorder %s402_s5, %s402_s5 }
  0x25   :  { %470 = vmatpush3.bf16.msra.mxu0 %v534_v3  ;;  %490 = vmatpush3.bf16.msra.mxu1 %v542_v8  ;;  %v429_v43 = vld [vmem:[%s773_s6] ss:$0 sm:$0xff]  ;;  %p599_p10 = scmp.ne.s32.totalorder %s402_s5, %s598_s4  ;;  %p604_p12 = scmp.lt.s32.totalorder %s598_s4, %s598_s4 }
  0x26   :  { %471 = vmatprep.subr.bf16.mxu0 %v628_v0  ;;  %491 = vmatprep.subr.bf16.mxu1 %v628_v0 }
  0x27   :  { %p605_p13 = por %p604_p12, %p603_p11 }
  0x29   :  { %472 = vmatpush3.bf16.msra.mxu0 %v535_v5  ;;  %492 = vmatpush3.bf16.msra.mxu1 %v543_v10  ;;  %p606_p0 = pnand %p605_p13, %p599_p10 }
  0x2a   :  { %473 = vmatprep.subr.bf16.mxu0 %v628_v0  ;;  %493 = vmatprep.subr.bf16.mxu1 %v628_v0 }
  0x2d   :  { %474 = vmatpush3.bf16.msra.mxu0 %v536_v7  ;;  %494 = vmatpush3.bf16.msra.mxu1 %v544_v12 }
  0x2e   :  { %475 = vmatprep.subr.bf16.mxu0 %v628_v0  ;;  %495 = vmatprep.subr.bf16.mxu1 %v628_v0 }
  0x31   :  { %476 = vmatpush3.bf16.msra.mxu0 %v537_v9  ;;  %496 = vmatpush3.bf16.msra.mxu1 %v545_v15 }
  0x32   :  { %477 = vmatprep.subr.bf16.mxu0 %v628_v0  ;;  %497 = vmatprep.subr.bf16.mxu1 %v628_v0 }
  0x35   :  { %478 = vmatpush3.bf16.msra.mxu0 %v538_v11  ;;  %498 = vmatpush3.bf16.msra.mxu1 %v546_v17 }
  0x36   :  { %479 = vmatprep.subr.bf16.mxu0 %v628_v0  ;;  %499 = vmatprep.subr.bf16.mxu1 %v628_v0 }
  0x39   :  { %480 = vmatpush3.bf16.msra.mxu0 %v539_v13  ;;  %500 = vmatpush3.bf16.msra.mxu1 %v547_v18 }
  0x3a   :  { %505 = vmatprep.subr.bf16.mxu0 %v628_v0 }
  0x3c   :  { %482 = vmatmul.mubr.bf16.vlgmr.msra.gmra.mxu0 %v72_v16 }
  0x3d   :  { %521 = vmatprep.mubr.msk.bf16.mxu0 %vm629_vm0, %v628_v0  ;;  %506 = vmatpush3.bf16.msra.mxu0 %v548_v19 }
  0x3e   :  { %507 = vmatprep.subr.bf16.mxu0 %v628_v0 }
  0x41   :  { %508 = vmatpush3.bf16.msra.mxu0 %v549_v20 }
  0x42   :  { %509 = vmatprep.subr.bf16.mxu0 %v628_v0 }
  0x45   :  { %510 = vmatpush3.bf16.msra.mxu0 %v550_v21 }
  0x46   :  { %511 = vmatprep.subr.bf16.mxu0 %v628_v0 }
  0x49   :  { %512 = vmatpush3.bf16.msra.mxu0 %v551_v30 }
  0x4a   :  { %513 = vmatprep.subr.bf16.mxu0 %v628_v0 }
  0x4d   :  { %514 = vmatpush3.bf16.msra.mxu0 %v552_v31 }
  0x4e   :  { %515 = vmatprep.subr.bf16.mxu0 %v628_v0 }
  0x51   :  { %516 = vmatpush3.bf16.msra.mxu0 %v553_v32 }
  0x52   :  { %517 = vmatprep.subr.bf16.mxu0 %v628_v0 }
  0x55   :  { %518 = vmatpush3.bf16.msra.mxu0 %v554_v33 }
  0x56   :  { %519 = vmatprep.subr.bf16.mxu0 %v628_v0 }
  0x59   :  { %520 = vmatpush3.bf16.msra.mxu0 %v555_v34 }
  0xfc   :  { %v161_v23 = vpop.f32.mrf.mxu0 }
  0xfd   :  { %v162_v24 = vadd.f32 %v411_v22, %v161_v23 }
  0xfe   :  { %v483_v25 = vpop.f32.mrf.mxu0 }
  0xff   :  { %v167_v26 = vmax.f32 %v162_v24, 0.0 }
 0x100   :  { %v164_v27 = vpop.f32.mrf.mxu0 }
 0x101   :  { %v185_v28 = vpack.c.bf16 %v167_v26, %v167_v26 }
 0x102   :  { %v484_v29 = vpop.f32.mrf.mxu0 }
 0x103   :  { %502 = vmatmul.mubr.bf16.vlgmr.msra.gmra.mxu1 %v185_v28 }
 0x1c3   :  { %v274_v36 = vpop.f32.mrf.mxu1 }
 0x1c4   :  { %v275_v37 = vadd.f32 %v420_v35, %v274_v36 }
 0x1c5   :  { %v503_v38 = vpop.f32.mrf.mxu1 }
 0x1c6   :  { %556 = vtanh.f32 %v275_v37 }
 0x1c7   :  { %v277_v39 = vpop.f32.mrf.mxu1 }
 0x1c9   :  { %v504_v40 = vpop.f32.mrf.mxu1 }
 0x1d3   :  { %v557_v41 = vpop.eup %556 }
 0x1d4   :  { %v298_v42 = vpack.c.bf16 %v557_v41, %v557_v41 }
 0x1d6   :  { %522 = vmatmul.mubr.bf16.vlgmr.msra.gmra.mxu0 %v298_v42 }
 0x296   :  { %v387_v44 = vpop.f32.mrf.mxu0 }
 0x297   :  { %v388_v45 = vadd.f32 %v429_v43, %v387_v44 }
 0x298   :  { %v523_v46 = vpop.f32.mrf.mxu0 }
 0x299   :  { %394 = vst.msk [vmem:[#allocation7] sm:$0xff] %vm393_vm1, %v388_v45 }
 0x29a   :  { %v390_v47 = vpop.f32.mrf.mxu0 }
 0x29b   :  { %609 = shalt.err (!%p606_p0)
}
 0x29c   :  { %404 = dma.vmem_to_hbm [thread:$0]  %s402_s5, 128, %s774_s7, [#allocation4]   ;;  %v524_v48 = vpop.f32.mrf.mxu0 }
 0x29d   :  { %622 = dma.done.wait [#allocation4], 128  }
 0x29e   :  { %623 = vsyncadd [#allocation4], 4294967168 }
 0x29f   :  { %408 = vsyncpa [#allocation3], 1 }
 0x2a0   :  { %409 = vsyncpa [#allocation6], 1 }
 0x2a1   :  { %410 = vsyncpa [#allocation4], 1 }

</bundles_post_ra>
